<compile_context>
chip_gen: v7x
topology: tpu7x:2x2x1
jax: 0.10.0
libtpu: 0.0.40
codegen_flags: <defaults>
</compile_context>

<pallas_src>
import functools
import math

import numpy as np
import jax
import jax.numpy as jnp
from jax.experimental import pallas as pl
from jax.experimental.pallas import tpu as pltpu


def mlp_kernel(x_ref, w1_ref, b1_ref, w2_ref, b2_ref, w3_ref, b3_ref, o_ref):
    """One batch tile: 3 matmuls + biases + 2 ReLUs, fully fused.

    Weights arrive pre-cast (bf16) and are the same VMEM-resident block for every
    grid step; only the streamed X tile / activations are cast per step. Matmuls
    accumulate in f32 on the MXU; bias add + ReLU stay in f32.
    """
    cdt = w1_ref.dtype
    x = x_ref[...].astype(cdt)
    h1 = jnp.dot(x, w1_ref[...], preferred_element_type=jnp.float32)
    h1 = jnp.maximum(h1 + b1_ref[...], 0.0)                       # ReLU (f32)
    h2 = jnp.dot(h1.astype(cdt), w2_ref[...], preferred_element_type=jnp.float32)
    h2 = jnp.maximum(h2 + b2_ref[...], 0.0)                       # ReLU (f32)
    out = jnp.dot(h2.astype(cdt), w3_ref[...], preferred_element_type=jnp.float32)
    o_ref[...] = (out + b3_ref[...]).astype(o_ref.dtype)


def _round_up(v, m):
    return pl.cdiv(v, m) * m


def _select_batch_tile(B, din, dh1, dh2, dout, block_b,
                       x_bytes, out_bytes, w_bytes, vmem_budget_bytes):
    # Enough tiles to (a) respect block_b, (b) bound batch-pad waste to <8 rows,
    # (c) give the v7x megacore >=2 tiles once B is big enough to amortize the
    # ~0.35us/step fixed overhead.
    num_tiles = max(pl.cdiv(B, block_b), 2 if B >= 1024 else 1)
    tb = min(_round_up(pl.cdiv(B, num_tiles), 8), _round_up(B, 8))

    def vmem_estimate(t):
        return (2 * t * din * x_bytes                              # X tile, double-buffered
                + 2 * t * dout * out_bytes                         # out tile, double-buffered
                + t * (dh1 + dh2) * 4                              # f32 intermediates h1/h2
                + w_bytes * (din * dh1 + dh1 * dh2 + dh2 * dout)   # resident weights (bf16)
                + 4 * (dh1 + dh2 + dout))                          # f32 biases

    while tb > 8 and vmem_estimate(tb) > vmem_budget_bytes:
        tb = _round_up(tb // 2, 8)
    return tb


@functools.partial(jax.jit, static_argnames=("block_b", "compute_dtype"))
def two_layer_fc(x, w1, b1, w2, b2, w3, b3, *, block_b=2048,
                 compute_dtype=jnp.bfloat16):
    B, din = x.shape
    dh1, dh2, dout = w1.shape[1], w2.shape[1], w3.shape[1]

    # Pre-cast weights once (grid-invariant work): halves their DMA bytes and
    # VMEM footprint vs. f32-resident weights, and removes the per-tile casts
    # from the kernel. Biases stay f32 (added after f32 accumulation).
    w1c = w1.astype(compute_dtype)
    w2c = w2.astype(compute_dtype)
    w3c = w3.astype(compute_dtype)

    w_bytes = np.dtype(compute_dtype).itemsize
    tb = _select_batch_tile(B, din, dh1, dh2, dout, block_b,
                            x.dtype.itemsize, x.dtype.itemsize, w_bytes,
                            vmem_budget_bytes=40 * 1024 * 1024)
    grid = (pl.cdiv(B, tb),)

    def resident(shape):   # same block every grid step -> fetched once, VMEM-resident
        return pl.BlockSpec(shape, lambda i: (0, 0))

    # No wrapper-side padding of X / output: last block dims equal the full array
    # dims (allowed by the (8,128) rule), so there are no extra HBM passes for
    # pad/slice. A ragged last batch tile is handled by Pallas boundary masking.
    return pl.pallas_call(
        mlp_kernel,
        out_shape=jax.ShapeDtypeStruct((B, dout), x.dtype),
        grid=grid,
        in_specs=[
            pl.BlockSpec((tb, din), lambda i: (i, 0)),   # streamed X tile
            resident((din, dh1)), resident((1, dh1)),
            resident((dh1, dh2)), resident((1, dh2)),
            resident((dh2, dout)), resident((1, dout)),
        ],
        out_specs=pl.BlockSpec((tb, dout), lambda i: (i, 0)),
        compiler_params=pltpu.CompilerParams(
            dimension_semantics=("parallel",),           # batch tiles independent
            vmem_limit_bytes=48 * 1024 * 1024,           # > scoped defaults, < v7x 64 MiB
        ),
    )(x, w1c, b1, w2c, b2, w3c, b3)


def init_linear(key, fan_in, fan_out):
    # Mimics PyTorch nn.Linear default init: U(-1/sqrt(fan_in), 1/sqrt(fan_in)).
    kw, kb = jax.random.split(key)
    bound = 1.0 / math.sqrt(fan_in)
    w = jax.random.uniform(kw, (fan_in, fan_out), jnp.float32, -bound, bound)
    b = jax.random.uniform(kb, (1, fan_out), jnp.float32, -bound, bound)
    return w, b


if __name__ == "__main__":
    # Small shapes consistent with TwoLayerFC(din, dh1, dh2, dout)
    B, din, dh1, dh2, dout = 8, 32, 64, 48, 16

    key = jax.random.PRNGKey(0)
    kx, k1, k2, k3 = jax.random.split(key, 4)

    x = jax.random.normal(kx, (B, din), jnp.float32)
    w1, b1 = init_linear(k1, din, dh1)
    w2, b2 = init_linear(k2, dh1, dh2)
    w3, b3 = init_linear(k3, dh2, dout)

    out = two_layer_fc(x, w1, b1, w2, b2, w3, b3)
    out = jax.block_until_ready(out)
    assert out.shape == (B, dout)

    # Pure-JAX reference with the same bf16-operand / f32-accumulate arithmetic.
    # TODO(synk): bf16 MXU operands deviate from PyTorch's default f32 Linear
    # numerics; pass compute_dtype=jnp.float32 if bit-level parity is required.
    def dot_bf16(a, w):
        return jnp.dot(a.astype(jnp.bfloat16), w.astype(jnp.bfloat16),
                       preferred_element_type=jnp.float32)

    ref = jnp.maximum(dot_bf16(x, w1) + b1, 0.0)
    ref = jnp.maximum(dot_bf16(ref, w2) + b2, 0.0)
    ref = dot_bf16(ref, w3) + b3
    assert jnp.allclose(out, ref, atol=1e-3, rtol=1e-3)

    print("KERNEL_OK")
</pallas_src>

<mosaic_0001>
module attributes {stable_mosaic.version = 11 : i64} {
  func.func @mlp_kernel(%arg0: i32, %arg1: memref<8x32xf32, #tpu.memory_space<vmem>>, %arg2: memref<32x64xbf16, #tpu.memory_space<vmem>>, %arg3: memref<1x64xf32, #tpu.memory_space<vmem>>, %arg4: memref<64x48xbf16, #tpu.memory_space<vmem>>, %arg5: memref<1x48xf32, #tpu.memory_space<vmem>>, %arg6: memref<48x16xbf16, #tpu.memory_space<vmem>>, %arg7: memref<1x16xf32, #tpu.memory_space<vmem>>, %arg8: memref<8x16xf32, #tpu.memory_space<vmem>>) attributes {dimension_semantics = [#tpu.dimension_semantics<parallel>], iteration_bounds = array<i64: 1>, scalar_prefetch = 0 : i64, scratch_operands = 0 : i64, tpu.core_type = #tpu.core_type<tc>, window_params = [{transform_indices = @transform_0, window_bounds = array<i64: 8, 32>}, {pipeline_mode = #tpu.pipeline_mode<synchronous>, transform_indices = @transform_1, window_bounds = array<i64: 32, 64>}, {pipeline_mode = #tpu.pipeline_mode<synchronous>, transform_indices = @transform_2, window_bounds = array<i64: 1, 64>}, {pipeline_mode = #tpu.pipeline_mode<synchronous>, transform_indices = @transform_3, window_bounds = array<i64: 64, 48>}, {pipeline_mode = #tpu.pipeline_mode<synchronous>, transform_indices = @transform_4, window_bounds = array<i64: 1, 48>}, {pipeline_mode = #tpu.pipeline_mode<synchronous>, transform_indices = @transform_5, window_bounds = array<i64: 48, 16>}, {pipeline_mode = #tpu.pipeline_mode<synchronous>, transform_indices = @transform_6, window_bounds = array<i64: 1, 16>}, {transform_indices = @transform_7, window_bounds = array<i64: 8, 16>}]} {
    %c0 = arith.constant 0 : index
    %c0_0 = arith.constant 0 : index
    %0 = vector.load %arg1[%c0, %c0_0] : memref<8x32xf32, #tpu.memory_space<vmem>>, vector<8x32xf32>
    %1 = arith.truncf %0 : vector<8x32xf32> to vector<8x32xbf16>
    %c0_1 = arith.constant 0 : index
    %c0_2 = arith.constant 0 : index
    %2 = vector.load %arg2[%c0_1, %c0_2] : memref<32x64xbf16, #tpu.memory_space<vmem>>, vector<32x64xbf16>
    %cst = arith.constant dense<0.000000e+00> : vector<8x64xf32>
    %3 = tpu.matmul %1, %2, %cst {dimension_numbers = #tpu.dot_dimension_numbers<[1], [0], [0], [1], [0, 0, 1, 1], [], []>} : vector<8x32xbf16>, vector<32x64xbf16>, vector<8x64xf32> -> vector<8x64xf32>
    %c0_3 = arith.constant 0 : index
    %c0_4 = arith.constant 0 : index
    %4 = vector.load %arg3[%c0_3, %c0_4] : memref<1x64xf32, #tpu.memory_space<vmem>>, vector<1x64xf32>
    %5 = vector.broadcast %4 : vector<1x64xf32> to vector<8x64xf32>
    %6 = arith.addf %3, %5 : vector<8x64xf32>
    %cst_5 = arith.constant 0.000000e+00 : f32
    %7 = vector.broadcast %cst_5 : f32 to vector<8x64xf32>
    %8 = arith.maximumf %6, %7 : vector<8x64xf32>
    %9 = arith.truncf %8 : vector<8x64xf32> to vector<8x64xbf16>
    %c0_6 = arith.constant 0 : index
    %c0_7 = arith.constant 0 : index
    %10 = vector.load %arg4[%c0_6, %c0_7] : memref<64x48xbf16, #tpu.memory_space<vmem>>, vector<64x48xbf16>
    %cst_8 = arith.constant dense<0.000000e+00> : vector<8x48xf32>
    %11 = tpu.matmul %9, %10, %cst_8 {dimension_numbers = #tpu.dot_dimension_numbers<[1], [0], [0], [1], [0, 0, 1, 1], [], []>} : vector<8x64xbf16>, vector<64x48xbf16>, vector<8x48xf32> -> vector<8x48xf32>
    %c0_9 = arith.constant 0 : index
    %c0_10 = arith.constant 0 : index
    %12 = vector.load %arg5[%c0_9, %c0_10] : memref<1x48xf32, #tpu.memory_space<vmem>>, vector<1x48xf32>
    %13 = vector.broadcast %12 : vector<1x48xf32> to vector<8x48xf32>
    %14 = arith.addf %11, %13 : vector<8x48xf32>
    %cst_11 = arith.constant 0.000000e+00 : f32
    %15 = vector.broadcast %cst_11 : f32 to vector<8x48xf32>
    %16 = arith.maximumf %14, %15 : vector<8x48xf32>
    %17 = arith.truncf %16 : vector<8x48xf32> to vector<8x48xbf16>
    %c0_12 = arith.constant 0 : index
    %c0_13 = arith.constant 0 : index
    %18 = vector.load %arg6[%c0_12, %c0_13] : memref<48x16xbf16, #tpu.memory_space<vmem>>, vector<48x16xbf16>
    %cst_14 = arith.constant dense<0.000000e+00> : vector<8x16xf32>
    %19 = tpu.matmul %17, %18, %cst_14 {dimension_numbers = #tpu.dot_dimension_numbers<[1], [0], [0], [1], [0, 0, 1, 1], [], []>} : vector<8x48xbf16>, vector<48x16xbf16>, vector<8x16xf32> -> vector<8x16xf32>
    %c0_15 = arith.constant 0 : index
    %c0_16 = arith.constant 0 : index
    %20 = vector.load %arg7[%c0_15, %c0_16] : memref<1x16xf32, #tpu.memory_space<vmem>>, vector<1x16xf32>
    %21 = vector.broadcast %20 : vector<1x16xf32> to vector<8x16xf32>
    %22 = arith.addf %19, %21 : vector<8x16xf32>
    %c0_17 = arith.constant 0 : index
    %c0_18 = arith.constant 0 : index
    %23 = vector.load %arg8[%c0_17, %c0_18] : memref<8x16xf32, #tpu.memory_space<vmem>>, vector<8x16xf32>
    tpu.vector_store %arg8[%c0_17, %c0_18], %22 {strides = array<i32>} : memref<8x16xf32, #tpu.memory_space<vmem>>, vector<8x16xf32>,
    return
  }
  func.func @transform_0(%arg0: i32) -> (i32, i32) {
    %c0_i32 = arith.constant 0 : i32
    %c0_i32_0 = arith.constant 0 : i32
    return %arg0, %c0_i32 : i32, i32
  }
  func.func @transform_1(%arg0: i32) -> (i32, i32) {
    %c0_i32 = arith.constant 0 : i32
    %c0_i32_0 = arith.constant 0 : i32
    %c0_i32_1 = arith.constant 0 : i32
    return %c0_i32, %c0_i32_0 : i32, i32
  }
  func.func @transform_2(%arg0: i32) -> (i32, i32) {
    %c0_i32 = arith.constant 0 : i32
    %c0_i32_0 = arith.constant 0 : i32
    %c0_i32_1 = arith.constant 0 : i32
    return %c0_i32, %c0_i32_0 : i32, i32
  }
  func.func @transform_3(%arg0: i32) -> (i32, i32) {
    %c0_i32 = arith.constant 0 : i32
    %c0_i32_0 = arith.constant 0 : i32
    %c0_i32_1 = arith.constant 0 : i32
    return %c0_i32, %c0_i32_0 : i32, i32
  }
  func.func @transform_4(%arg0: i32) -> (i32, i32) {
    %c0_i32 = arith.constant 0 : i32
    %c0_i32_0 = arith.constant 0 : i32
    %c0_i32_1 = arith.constant 0 : i32
    return %c0_i32, %c0_i32_0 : i32, i32
  }
  func.func @transform_5(%arg0: i32) -> (i32, i32) {
    %c0_i32 = arith.constant 0 : i32
    %c0_i32_0 = arith.constant 0 : i32
    %c0_i32_1 = arith.constant 0 : i32
    return %c0_i32, %c0_i32_0 : i32, i32
  }
  func.func @transform_6(%arg0: i32) -> (i32, i32) {
    %c0_i32 = arith.constant 0 : i32
    %c0_i32_0 = arith.constant 0 : i32
    %c0_i32_1 = arith.constant 0 : i32
    return %c0_i32, %c0_i32_0 : i32, i32
  }
  func.func @transform_7(%arg0: i32) -> (i32, i32) {
    %c0_i32 = arith.constant 0 : i32
    %c0_i32_0 = arith.constant 0 : i32
    return %arg0, %c0_i32 : i32, i32
  }
}

</mosaic_0001>

<bundles_post_ra>
// kernel: two_layer_fc.1
= control target key start
LH: loop header
LB: loop body
LE: loop exit
PB: predicated region body
PF: predicated region fallthrough
CT: control target
= control target key end

     0   :  { %v368_v1 = vmov 0.0   ;;  %vm369_vm0 = vmmov 0   ;;  %vm53_vm1 = vcmask 261120   ;;  %s465_s0 = inlined_call_operand.vmem [shape: f32[8,32], index: 0, kind: input, shape index: {}]   ;;  %s466_s1 = inlined_call_operand.vmem [shape: bf16[32,64], index: 1, kind: input, shape index: {}]   ;;  %s467_s2 = inlined_call_operand.vmem [shape: f32[1,64], index: 2, kind: input, shape index: {}]   ;;  %s468_s3 = inlined_call_operand.vmem [shape: bf16[64,48], index: 3, kind: input, shape index: {}]   ;;  %s469_s4 = inlined_call_operand.vmem [shape: f32[1,48], index: 4, kind: input, shape index: {}]   ;;  %s470_s5 = inlined_call_operand.vmem [shape: bf16[48,16], index: 5, kind: input, shape index: {}]   ;;  %s471_s6 = inlined_call_operand.vmem [shape: f32[1,16], index: 6, kind: input, shape index: {}]   ;;  %s472_s7 = inlined_call_operand.hbm [shape: f32[8,16], index: 7, kind: output, shape index: {}]  }
   0x1   :  { %v335_v0 = vld [vmem:[%s466_s1] sm:$0xff]   ;;  %302 = vmatprep.subr.bf16.mxu0 %v368_v1  ;;  %v336_v2 = vld [vmem:[%s466_s1 + $0x8] sm:$0xff]   ;;  %310 = vmatprep.subr.bf16.mxu1 %v368_v1 }
   0x2   :  { %303 = vmatpush3.bf16.msra.mxu0 %v335_v0  ;;  %306 = vmatprep.mubr.msk.bf16.mxu0 %vm369_vm0, %v368_v1  ;;  %v28_v3 = vld [vmem:[%s465_s0] sm:$0xff]  ;;  %v338_v5 = vld [vmem:[%s468_s3 + $0x8] sm:$0xff]  }
   0x3   :  { %304 = vmatprep.subr.bf16.mxu0 %v368_v1  ;;  %v337_v4 = vld [vmem:[%s468_s3] sm:$0xff]   ;;  %318 = vmatprep.mubr.msk.bf16.mxu1 %vm369_vm0, %v368_v1  ;;  %v29_v6 = vpack.c.bf16 %v28_v3, %v28_v3 }
   0x4   :  { %311 = vmatpush3.bf16.msra.mxu1 %v337_v4 }
   0x5   :  { %312 = vmatprep.subr.bf16.mxu1 %v368_v1 }
   0x6   :  { %305 = vmatpush3.bf16.msra.mxu0 %v336_v2 }
   0x7   :  { %322 = vmatprep.subr.bf16.mxu0 %v368_v1 }
   0x8   :  { %12 = vsyncpa [#allocation3], 0  ;;  %313 = vmatpush3.bf16.msra.mxu1 %v338_v5  ;;  %v339_v7 = vld [vmem:[%s468_s3 + $0x10] sm:$0xff]   ;;  %v340_v8 = vld [vmem:[%s468_s3 + $0x18] sm:$0xff]   ;;  %vm138_vm2 = vcmask 523264   ;;  %vm215_vm3 = vcmask 392192  }
   0x9   :  { %307 = vmatmul.mubr.msk.bf16.vlgmr.msra.gmra.mrb[0].mxu0 %vm53_vm1, %v29_v6  ;;  %314 = vmatprep.subr.bf16.mxu1 %v368_v1  ;;  %v341_v9 = vld [vmem:[%s470_s5] sm:$0xff]   ;;  %v342_v18 = vld [vmem:[%s470_s5 + $0x8] sm:$0xff]   ;;  %v343_v19 = vld [vmem:[%s470_s5 + $0x10] sm:$0xff]   ;;  %s370_s23 = smov [#allocation2]   ;;  %vm259_vm4 = vcmask 130048  }
   0xa   :  { %328 = vmatprep.mubr.msk.bf16.mxu0 %vm369_vm0, %v368_v1  ;;  %323 = vmatpush3.bf16.msra.mxu0 %v341_v9  ;;  %v275_v10 = vld [vmem:[%s467_s2] ss:$0 sm:$0xff]  ;;  %s267_s5 = sshll.u32 %s370_s23, 4  ;;  %s268_s5 = int_to_ptr.vmem [resolvable:$true] %s267_s5 }
   0xb   :  { %324 = vmatprep.subr.bf16.mxu0 %v368_v1  ;;  %v279_v20 = vld [vmem:[%s469_s4] ss:$0 sm:$0xff]  ;;  %s344_s4 = scalar_lea.vmem %s268_s5, 128  ;;  %p349_p1 = scmp.lt.s32.totalorder %s268_s5, %s268_s5 }
   0xc   :  { %315 = vmatpush3.bf16.msra.mxu1 %v339_v7  ;;  %v285_v28 = vld [vmem:[%s471_s6] ss:$0 sm:$0xff]  ;;  %p345_p0 = scmp.ne.s32.totalorder %s268_s5, %s344_s4  ;;  %p350_p2 = scmp.lt.s32.totalorder %s344_s4, %s344_s4 }
   0xd   :  { %316 = vmatprep.subr.bf16.mxu1 %v368_v1 }
   0xe   :  { %325 = vmatpush3.bf16.msra.mxu0 %v342_v18  ;;  %p351_p3 = por %p350_p2, %p349_p1 }
   0xf   :  { %326 = vmatprep.subr.bf16.mxu0 %v368_v1 }
  0x10   :  { %317 = vmatpush3.bf16.msra.mxu1 %v340_v8  ;;  %p352_p4 = pnand %p351_p3, %p345_p0 }
  0x12   :  { %327 = vmatpush3.bf16.msra.mxu0 %v343_v19 }
  0xdc   :  { %v91_v11 = vpop.f32.mrb[0].mxu0 }
  0xdd   :  { %v92_v12 = vadd.f32 %v275_v10, %v91_v11  ;;  %v308_v13 = vpop.f32.mrb[1].mxu0 }
  0xde   :  { %v94_v14 = vpop.f32.mrb[2].mxu0 }
  0xdf   :  { %v97_v15 = vmax.f32 %v92_v12, 0.0  ;;  %v309_v16 = vpop.f32.mrb[3].mxu0 }
  0xe1   :  { %v98_v17 = vpack.c.bf16 %v97_v15, %v97_v15 }
  0xe3   :  { %319 = vmatmul.mubr.msk.bf16.vlgmr.msra.gmra.mrb[0].mxu1 %vm138_vm2, %v98_v17 }
 0x1b6   :  { %v176_v21 = vpop.f32.mrb[0].mxu1 }
 0x1b7   :  { %v177_v22 = vadd.f32 %v279_v20, %v176_v21  ;;  %v320_v23 = vpop.f32.mrb[1].mxu1 }
 0x1b8   :  { %v179_v24 = vpop.f32.mrb[2].mxu1 }
 0x1b9   :  { %v182_v25 = vmax.f32 %v177_v22, 0.0  ;;  %v321_v26 = vpop.f32.mrb[3].mxu1 }
 0x1bb   :  { %v183_v27 = vpack.c.bf16 %v182_v25, %v182_v25 }
 0x1bd   :  { %329 = vmatmul.mubr.msk.bf16.vlgmr.msra.gmra.mrb[4].mxu0 %vm215_vm3, %v183_v27 }
 0x290   :  { %v253_v29 = vpop.f32.mrb[4].mxu0 }
 0x291   :  { %v254_v30 = vadd.f32 %v285_v28, %v253_v29  ;;  %v330_v31 = vpop.f32.mrb[5].mxu0 }
 0x292   :  { %v256_v32 = vpop.f32.mrb[6].mxu0 }
 0x293   :  { %v331_v33 = vpop.f32.mrb[7].mxu0  ;;  %260 = vst.msk [vmem:[#allocation2] sm:$0xff] %vm259_vm4, %v254_v30 }
 0x294   :  { %355 = shalt.err (!%p352_p4)
}
 0x295   :  { %s356_s6 = scalar_lea.hbm %s472_s7, 128 }
 0x296   :  { %p357_p5 = scmp.ne.s32.totalorder %s472_s7, %s356_s6  ;;  %p360_p6 = scmp.lt.u32.totalorder %s356_s6, %s472_s7 }
 0x298   :  { %p362_p7 = pnand %p360_p6, %p357_p5 }
 0x29a   :  { %365 = shalt.err (!%p362_p7)
}
 0x29b   :  { %270 = dma.vmem_to_hbm [thread:$0]  %s268_s5, 128, %s472_s7, [#allocation3]  }
 0x29c   :  { %366 = dma.done.wait [#allocation3], 128  }
 0x29d   :  { %367 = vsyncadd [#allocation3], 4294967168 }
 0x29e   :  { %274 = vsyncpa [#allocation3], 1 }

</bundles_post_ra>
